<compile_context>
chip_gen: v7x
topology: tpu7x:2x2x1
jax: 0.10.0
libtpu: 0.0.40
codegen_flags: <defaults>
</compile_context>

<pallas_src>
import functools

import jax
import jax.numpy as jnp
from jax import lax
from jax.experimental import pallas as pl
from jax.experimental.pallas import tpu as pltpu

ALPHA = 0.0005          # Manifold.alpha
K = 2                   # Manifold.k
NUM_CLASSES = 10


def _vmem_spec():
    # whole-array block resident in VMEM (gridless; all operands are tiny)
    return pl.BlockSpec(memory_space=pltpu.MemorySpace.VMEM)


def _pairwise_sq_dists(z):
    """d2[i, j] = ||z_i - z_j||^2 via the Gram identity, O(n^2) memory.

    Both diagonal terms come from the Gram matrix itself: diag_col via a
    lane-axis reduce of the diag-masked Gram, diag_row via a (1,n)x(n,n) MXU
    matvec on the same masked matrix.  No axis=0 (sublane/XLU) reduction, and
    diag(d2) is exactly zero; clamp handles fp cancellation off-diagonal.
    """
    n = z.shape[0]
    gram = jnp.einsum("id,jd->ij", z, z,
                      preferred_element_type=jnp.float32)              # (n, n) on MXU, f32 acc
    rows = lax.broadcasted_iota(jnp.int32, (n, n), 0)
    cols = lax.broadcasted_iota(jnp.int32, (n, n), 1)
    ge = gram * (rows == cols).astype(jnp.float32)                     # diag-masked Gram
    diag_col = jnp.sum(ge, axis=1, keepdims=True)                      # (n, 1) ||z_i||^2, lane reduce
    diag_row = jnp.dot(jnp.ones((1, n), jnp.float32), ge,
                       preferred_element_type=jnp.float32)             # (1, n) ||z_j||^2, MXU matvec
    d2 = diag_col + diag_row - 2.0 * gram
    return jnp.maximum(d2, 0.0)


# ---------------------------------------------------------------------------
# Fused kernel:
#   loss  = mean CE( x @ W + b , y )
#   reg   = sum_{i,j} ||y_out_i - y_out_j|| * w_int[i,j]
#   w_int[i,j] = exp(-d_sorted[i, j]) * [j in (k+1)-NN(i)] * [y_i == y_j]
#   (d_sorted[i, j] is the j-th *smallest* distance in row i — faithful to the
#    reference, which indexes the sorted-distance matrix with the sample index)
#   out   = loss + alpha * reg
# ---------------------------------------------------------------------------
def manifold_fused_kernel(x_ref, w_ref, b_ref, ycol_ref, yrow_ref, yout_ref,
                          total_ref, *, k, alpha):
    x = x_ref[...]            # (n, F)   f32 (rank/distance path stays f32)
    w = w_ref[...]            # (F, C)   mxu_dtype
    b = b_ref[...]            # (1, C)   f32
    ycol = ycol_ref[...]      # (n, 1)   int32
    yrow = yrow_ref[...]      # (1, n)   int32
    yout = yout_ref[...]      # (n, C)   mxu_dtype
    n = x.shape[0]
    c = w.shape[1]

    # -------- loss_function(net(x), y): linear head + mean cross-entropy -----
    logits = jnp.dot(x.astype(w.dtype), w,
                     preferred_element_type=jnp.float32) + b           # (n, C) f32
    m = jnp.max(logits, axis=-1, keepdims=True)                        # (n, 1)
    lse = m + jnp.log(jnp.sum(jnp.exp(logits - m), axis=-1, keepdims=True))
    class_ids = lax.broadcasted_iota(jnp.int32, (n, c), 1)
    picked = jnp.sum((class_ids == ycol).astype(jnp.float32) * logits,
                     axis=-1, keepdims=True)                           # true-class logit
    nll = lse - picked                                                 # (n, 1)
    loss = jnp.sum(nll, axis=0, keepdims=True) * (1.0 / n)             # (1, 1)

    # -------- manifold regularizer (all O(n^2) memory) ------------------------
    d2_x = _pairwise_sq_dists(x)                  # squared dists; rank on squared (f32)
    d_y = jnp.sqrt(_pairwise_sq_dists(yout))      # (n, n) output-space distances

    same = (ycol == yrow).astype(jnp.float32)     # (n, n) same-class gate

    col_ids = lax.broadcasted_iota(jnp.int32, (n, n), 1)
    col_ids_f = col_ids.astype(jnp.float32)       # exact up to 2^24; asserted in wrapper
    big = jnp.float32(1e30)
    k1 = min(k + 1, n)

    # Selection over the (n, n) squared-distance matrix: step r picks the r-th
    # nearest neighbour of every row (ties -> lowest sample index, matching a
    # stable argsort / sklearn kneighbors) and records the r-th smallest
    # squared distance in column r of `dsrt`.  Selected columns are knocked out
    # in-place (+1e30), so there is no `remaining` mask carry.  The full n
    # steps are required (not just k+1) because the reference indexes the
    # sorted-distance row with the *sample index* j of each neighbour; `nbr`
    # (k-NN membership) is only maintained during the first k+1 steps.
    def make_step(with_nbr):
        def step(r, carry):
            if with_nbr:
                d2w, nbr, dsrt = carry
            else:
                d2w, dsrt = carry
            minval = jnp.min(d2w, axis=-1, keepdims=True)              # (n, 1)
            cand = jnp.where(d2w == minval, col_ids_f, jnp.float32(n))
            sel = jnp.min(cand, axis=-1, keepdims=True)                # argmin, ties->low idx
            onehot_sel = (col_ids_f == sel).astype(jnp.float32)        # (n, n)
            d2w = d2w + onehot_sel * big                               # knock out selected col
            dsrt = dsrt + (col_ids == r).astype(jnp.float32) * minval  # scatter into column r
            if with_nbr:
                return d2w, nbr + onehot_sel, dsrt
            return d2w, dsrt
        return step

    zero_nn = jnp.zeros((n, n), jnp.float32)
    d2w, nbr, dsrt = lax.fori_loop(0, k1, make_step(True),
                                   (d2_x, zero_nn, zero_nn), unroll=True)
    d2w, dsrt = lax.fori_loop(k1, n, make_step(False), (d2w, dsrt),
                              unroll=True if (n - k1) <= 16 else 8)

    # sqrt/exp hoisted out of the serial loop: one (n, n) EUP pass.
    e_d = jnp.exp(-jnp.sqrt(dsrt))
    w_int = e_d * nbr * same                                           # == w_diff
    reg = jnp.sum(jnp.sum(d_y * w_int, axis=1, keepdims=True),
                  axis=0, keepdims=True)                               # (1, 1)

    total_ref[...] = loss + alpha * reg


# ---------------------------------------------------------------------------
# Manifold.forward(x_batch, y_batch, y_output)
# ---------------------------------------------------------------------------
def manifold_forward(x_batch, y_batch, y_output, w_net, b_net,
                     alpha=ALPHA, k=K, mxu_dtype=jnp.float32):
    n = x_batch.shape[0]
    assert n < (1 << 24), "float32 column-index tie-break requires n < 2^24"
    x_flat = x_batch.reshape(n, -1).astype(jnp.float32)   # x stays f32: rank/distance path
    c = w_net.shape[-1]

    # No class-dim padding: Mosaic lane-pads (·, c) VMEM blocks internally, so the
    # raw (F, c)/(1, c)/(n, c) arrays go straight in and the kernel needs no
    # padded-class masking.  `mxu_dtype` (bf16 on v6e/v7x at production sizes)
    # only touches the logits matmul and the output-space Gram.
    w_in = w_net.astype(mxu_dtype)
    b_in = b_net.reshape(1, c).astype(jnp.float32)
    yout_in = y_output.astype(mxu_dtype)
    ycol = y_batch.reshape(n, 1).astype(jnp.int32)
    yrow = y_batch.reshape(1, n).astype(jnp.int32)

    total = pl.pallas_call(
        functools.partial(manifold_fused_kernel, k=int(k), alpha=float(alpha)),
        out_shape=jax.ShapeDtypeStruct((1, 1), jnp.float32),
        in_specs=[_vmem_spec()] * 6,
        out_specs=_vmem_spec(),
        # Explicit override: above v5e's 16 MiB *default scoped* limit (legal) and
        # well inside physical VMEM everywhere (128 MiB v5e/v6e, 64 MiB v7x); all
        # intermediates are O(n^2) f32 plus x_flat.
        compiler_params=pltpu.CompilerParams(vmem_limit_bytes=32 * 1024 * 1024),
    )(x_flat, w_in, b_in, ycol, yrow, yout_in)
    return total[0, 0]


if __name__ == "__main__":
    key = jax.random.PRNGKey(0)
    kx, kw, ky = jax.random.split(key, 3)

    # Small shapes consistent with the forward: image batch (NCHW), int labels,
    # per-sample network outputs.  Batch must exceed k+1 for the k-NN to be sane.
    N, C, H, W = 8, 4, 16, 16
    F = C * H * W

    x = jax.random.normal(kx, (N, C, H, W), dtype=jnp.float32)
    y = jax.random.randint(ky, (N,), 0, NUM_CLASSES, dtype=jnp.int32)

    # Deterministic "network" parameters (linear head over the flattened input).
    w_net = jax.random.normal(kw, (F, NUM_CLASSES), dtype=jnp.float32) * 0.02
    b_net = jnp.zeros((1, NUM_CLASSES), dtype=jnp.float32)

    # y_output is an input of Manifold.forward in the reference; construct it
    # here as the linear head's output (plain jnp — test-input construction).
    y_output = x.reshape(N, -1) @ w_net + b_net

    # mxu_dtype=jnp.bfloat16 is the production choice on v6e/v7x; f32 at toy shapes.
    total = manifold_forward(x, y, y_output, w_net, b_net, mxu_dtype=jnp.float32)
    total = jax.block_until_ready(total)
    assert jnp.isfinite(total)
    print("KERNEL_OK")
</pallas_src>

<mosaic_0001>
module attributes {stable_mosaic.version = 11 : i64} {
  func.func @manifold_fused_kernel(%arg0: memref<8x1024xf32, #tpu.memory_space<vmem>>, %arg1: memref<1024x10xf32, #tpu.memory_space<vmem>>, %arg2: memref<1x10xf32, #tpu.memory_space<vmem>>, %arg3: memref<8x1xi32, #tpu.memory_space<vmem>>, %arg4: memref<1x8xi32, #tpu.memory_space<vmem>>, %arg5: memref<8x10xf32, #tpu.memory_space<vmem>>, %arg6: memref<1x1xf32, #tpu.memory_space<vmem>>) attributes {dimension_semantics = [], scalar_prefetch = 0 : i64, scratch_operands = 0 : i64, tpu.core_type = #tpu.core_type<tc>} {
    %c0 = arith.constant 0 : index
    %c0_0 = arith.constant 0 : index
    %0 = vector.load %arg0[%c0, %c0_0] : memref<8x1024xf32, #tpu.memory_space<vmem>>, vector<8x1024xf32>
    %c0_1 = arith.constant 0 : index
    %c0_2 = arith.constant 0 : index
    %1 = vector.load %arg1[%c0_1, %c0_2] : memref<1024x10xf32, #tpu.memory_space<vmem>>, vector<1024x10xf32>
    %c0_3 = arith.constant 0 : index
    %c0_4 = arith.constant 0 : index
    %2 = vector.load %arg2[%c0_3, %c0_4] : memref<1x10xf32, #tpu.memory_space<vmem>>, vector<1x10xf32>
    %c0_5 = arith.constant 0 : index
    %c0_6 = arith.constant 0 : index
    %3 = vector.load %arg3[%c0_5, %c0_6] : memref<8x1xi32, #tpu.memory_space<vmem>>, vector<8x1xi32>
    %c0_7 = arith.constant 0 : index
    %c0_8 = arith.constant 0 : index
    %4 = vector.load %arg4[%c0_7, %c0_8] : memref<1x8xi32, #tpu.memory_space<vmem>>, vector<1x8xi32>
    %c0_9 = arith.constant 0 : index
    %c0_10 = arith.constant 0 : index
    %5 = vector.load %arg5[%c0_9, %c0_10] : memref<8x10xf32, #tpu.memory_space<vmem>>, vector<8x10xf32>
    %cst = arith.constant dense<0.000000e+00> : vector<8x10xf32>
    %6 = tpu.matmul %0, %1, %cst {dimension_numbers = #tpu.dot_dimension_numbers<[1], [0], [0], [1], [0, 0, 1, 1], [], []>} : vector<8x1024xf32>, vector<1024x10xf32>, vector<8x10xf32> -> vector<8x10xf32>
    %7 = vector.broadcast %2 : vector<1x10xf32> to vector<8x10xf32>
    %8 = arith.addf %6, %7 : vector<8x10xf32>
    %cst_11 = arith.constant dense<0xFF800000> : vector<8xf32>
    %9 = vector.multi_reduction <maximumf>, %8, %cst_11 [1] : vector<8x10xf32> to vector<8xf32>
    %10 = vector.shape_cast %9 : vector<8xf32> to vector<8x1xf32>
    %11 = vector.broadcast %10 : vector<8x1xf32> to vector<8x10xf32>
    %12 = arith.subf %8, %11 : vector<8x10xf32>
    %13 = math.exp %12 : vector<8x10xf32>
    %cst_12 = arith.constant dense<0.000000e+00> : vector<8xf32>
    %14 = vector.multi_reduction <add>, %13, %cst_12 [1] : vector<8x10xf32> to vector<8xf32>
    %15 = vector.shape_cast %14 : vector<8xf32> to vector<8x1xf32>
    %16 = math.log %15 : vector<8x1xf32>
    %17 = arith.addf %10, %16 : vector<8x1xf32>
    %18 = tpu.iota {dimensions = array<i32: 1>} : vector<8x10xi32>
    %19 = vector.broadcast %3 : vector<8x1xi32> to vector<8x10xi32>
    %20 = arith.cmpi eq, %18, %19 : vector<8x10xi32>
    %21 = arith.extui %20 : vector<8x10xi1> to vector<8x10xi32>
    %22 = arith.sitofp %21 : vector<8x10xi32> to vector<8x10xf32>
    %23 = arith.mulf %22, %8 : vector<8x10xf32>
    %cst_13 = arith.constant dense<0.000000e+00> : vector<8xf32>
    %24 = vector.multi_reduction <add>, %23, %cst_13 [1] : vector<8x10xf32> to vector<8xf32>
    %25 = vector.shape_cast %24 : vector<8xf32> to vector<8x1xf32>
    %26 = arith.subf %17, %25 : vector<8x1xf32>
    %cst_14 = arith.constant dense<0.000000e+00> : vector<1xf32>
    %27 = vector.multi_reduction <add>, %26, %cst_14 [0] : vector<8x1xf32> to vector<1xf32>
    %28 = vector.shape_cast %27 : vector<1xf32> to vector<1x1xf32>
    %cst_15 = arith.constant 1.250000e-01 : f32
    %29 = vector.broadcast %cst_15 : f32 to vector<1x1xf32>
    %30 = arith.mulf %28, %29 : vector<1x1xf32>
    "tpu.trace_start"() <{level = 10 : i32, message = "id,jd->ij"}> : () -> ()
    %cst_16 = arith.constant dense<0.000000e+00> : vector<8x8xf32>
    %31 = tpu.matmul %0, %0, %cst_16 {dimension_numbers = #tpu.dot_dimension_numbers<[1], [1], [0], [0], [0, 0, 1, 0], [], []>} : vector<8x1024xf32>, vector<8x1024xf32>, vector<8x8xf32> -> vector<8x8xf32>
    "tpu.trace_stop"() : () -> ()
    %32 = tpu.iota {dimensions = array<i32: 0>} : vector<8x8xi32>
    %33 = tpu.iota {dimensions = array<i32: 1>} : vector<8x8xi32>
    %34 = arith.cmpi eq, %32, %33 : vector<8x8xi32>
    %35 = arith.extui %34 : vector<8x8xi1> to vector<8x8xi32>
    %36 = arith.sitofp %35 : vector<8x8xi32> to vector<8x8xf32>
    %37 = arith.mulf %31, %36 : vector<8x8xf32>
    %cst_17 = arith.constant dense<0.000000e+00> : vector<8xf32>
    %38 = vector.multi_reduction <add>, %37, %cst_17 [1] : vector<8x8xf32> to vector<8xf32>
    %39 = vector.shape_cast %38 : vector<8xf32> to vector<8x1xf32>
    %cst_18 = arith.constant 1.000000e+00 : f32
    %40 = vector.broadcast %cst_18 : f32 to vector<1x8xf32>
    %cst_19 = arith.constant dense<0.000000e+00> : vector<1x8xf32>
    %41 = tpu.matmul %40, %37, %cst_19 {dimension_numbers = #tpu.dot_dimension_numbers<[1], [0], [0], [1], [0, 0, 1, 1], [], []>} : vector<1x8xf32>, vector<8x8xf32>, vector<1x8xf32> -> vector<1x8xf32>
    %42 = vector.broadcast %39 : vector<8x1xf32> to vector<8x8xf32>
    %43 = vector.broadcast %41 : vector<1x8xf32> to vector<8x8xf32>
    %44 = arith.addf %42, %43 : vector<8x8xf32>
    %cst_20 = arith.constant 2.000000e+00 : f32
    %45 = vector.broadcast %cst_20 : f32 to vector<8x8xf32>
    %46 = arith.mulf %45, %31 : vector<8x8xf32>
    %47 = arith.subf %44, %46 : vector<8x8xf32>
    %cst_21 = arith.constant 0.000000e+00 : f32
    %48 = vector.broadcast %cst_21 : f32 to vector<8x8xf32>
    %49 = arith.maximumf %47, %48 : vector<8x8xf32>
    "tpu.trace_start"() <{level = 10 : i32, message = "id,jd->ij"}> : () -> ()
    %cst_22 = arith.constant dense<0.000000e+00> : vector<8x8xf32>
    %50 = tpu.matmul %5, %5, %cst_22 {dimension_numbers = #tpu.dot_dimension_numbers<[1], [1], [0], [0], [0, 0, 1, 0], [], []>} : vector<8x10xf32>, vector<8x10xf32>, vector<8x8xf32> -> vector<8x8xf32>
    "tpu.trace_stop"() : () -> ()
    %51 = tpu.iota {dimensions = array<i32: 0>} : vector<8x8xi32>
    %52 = tpu.iota {dimensions = array<i32: 1>} : vector<8x8xi32>
    %53 = arith.cmpi eq, %51, %52 : vector<8x8xi32>
    %54 = arith.extui %53 : vector<8x8xi1> to vector<8x8xi32>
    %55 = arith.sitofp %54 : vector<8x8xi32> to vector<8x8xf32>
    %56 = arith.mulf %50, %55 : vector<8x8xf32>
    %cst_23 = arith.constant dense<0.000000e+00> : vector<8xf32>
    %57 = vector.multi_reduction <add>, %56, %cst_23 [1] : vector<8x8xf32> to vector<8xf32>
    %58 = vector.shape_cast %57 : vector<8xf32> to vector<8x1xf32>
    %cst_24 = arith.constant 1.000000e+00 : f32
    %59 = vector.broadcast %cst_24 : f32 to vector<1x8xf32>
    %cst_25 = arith.constant dense<0.000000e+00> : vector<1x8xf32>
    %60 = tpu.matmul %59, %56, %cst_25 {dimension_numbers = #tpu.dot_dimension_numbers<[1], [0], [0], [1], [0, 0, 1, 1], [], []>} : vector<1x8xf32>, vector<8x8xf32>, vector<1x8xf32> -> vector<1x8xf32>
    %61 = vector.broadcast %58 : vector<8x1xf32> to vector<8x8xf32>
    %62 = vector.broadcast %60 : vector<1x8xf32> to vector<8x8xf32>
    %63 = arith.addf %61, %62 : vector<8x8xf32>
    %cst_26 = arith.constant 2.000000e+00 : f32
    %64 = vector.broadcast %cst_26 : f32 to vector<8x8xf32>
    %65 = arith.mulf %64, %50 : vector<8x8xf32>
    %66 = arith.subf %63, %65 : vector<8x8xf32>
    %cst_27 = arith.constant 0.000000e+00 : f32
    %67 = vector.broadcast %cst_27 : f32 to vector<8x8xf32>
    %68 = arith.maximumf %66, %67 : vector<8x8xf32>
    %69 = math.sqrt %68 : vector<8x8xf32>
    %70 = vector.broadcast %3 : vector<8x1xi32> to vector<8x8xi32>
    %71 = vector.broadcast %4 : vector<1x8xi32> to vector<8x8xi32>
    %72 = arith.cmpi eq, %70, %71 : vector<8x8xi32>
    %73 = arith.extui %72 : vector<8x8xi1> to vector<8x8xi32>
    %74 = arith.sitofp %73 : vector<8x8xi32> to vector<8x8xf32>
    %75 = tpu.iota {dimensions = array<i32: 1>} : vector<8x8xi32>
    %76 = arith.sitofp %75 : vector<8x8xi32> to vector<8x8xf32>
    %cst_28 = arith.constant 0.000000e+00 : f32
    %77 = vector.broadcast %cst_28 : f32 to vector<8x8xf32>
    %cst_29 = arith.constant 1.000000e+30 : f32
    %c0_i32 = arith.constant 0 : i32
    %cst_30 = arith.constant dense<0x7F800000> : vector<8xf32>
    %78 = vector.multi_reduction <minimumf>, %49, %cst_30 [1] : vector<8x8xf32> to vector<8xf32>
    %79 = vector.shape_cast %78 : vector<8xf32> to vector<8x1xf32>
    %80 = vector.broadcast %79 : vector<8x1xf32> to vector<8x8xf32>
    %81 = arith.cmpf oeq, %49, %80 : vector<8x8xf32>
    %cst_31 = arith.constant 8.000000e+00 : f32
    %82 = vector.broadcast %cst_31 : f32 to vector<8x8xf32>
    %83 = arith.select %81, %76, %82 : vector<8x8xi1>, vector<8x8xf32>
    %cst_32 = arith.constant dense<0x7F800000> : vector<8xf32>
    %84 = vector.multi_reduction <minimumf>, %83, %cst_32 [1] : vector<8x8xf32> to vector<8xf32>
    %85 = vector.shape_cast %84 : vector<8xf32> to vector<8x1xf32>
    %86 = vector.broadcast %85 : vector<8x1xf32> to vector<8x8xf32>
    %87 = arith.cmpf oeq, %76, %86 : vector<8x8xf32>
    %88 = arith.extui %87 : vector<8x8xi1> to vector<8x8xi32>
    %89 = arith.sitofp %88 : vector<8x8xi32> to vector<8x8xf32>
    %90 = vector.broadcast %cst_29 : f32 to vector<8x8xf32>
    %91 = arith.mulf %89, %90 : vector<8x8xf32>
    %92 = arith.addf %49, %91 : vector<8x8xf32>
    %93 = vector.broadcast %c0_i32 : i32 to vector<8x8xi32>
    %94 = arith.cmpi eq, %75, %93 : vector<8x8xi32>
    %95 = arith.extui %94 : vector<8x8xi1> to vector<8x8xi32>
    %96 = arith.sitofp %95 : vector<8x8xi32> to vector<8x8xf32>
    %97 = vector.broadcast %79 : vector<8x1xf32> to vector<8x8xf32>
    %98 = arith.mulf %96, %97 : vector<8x8xf32>
    %99 = arith.addf %77, %98 : vector<8x8xf32>
    %100 = arith.addf %77, %89 : vector<8x8xf32>
    %c1_i32 = arith.constant 1 : i32
    %cst_33 = arith.constant dense<0x7F800000> : vector<8xf32>
    %101 = vector.multi_reduction <minimumf>, %92, %cst_33 [1] : vector<8x8xf32> to vector<8xf32>
    %102 = vector.shape_cast %101 : vector<8xf32> to vector<8x1xf32>
    %103 = vector.broadcast %102 : vector<8x1xf32> to vector<8x8xf32>
    %104 = arith.cmpf oeq, %92, %103 : vector<8x8xf32>
    %cst_34 = arith.constant 8.000000e+00 : f32
    %105 = vector.broadcast %cst_34 : f32 to vector<8x8xf32>
    %106 = arith.select %104, %76, %105 : vector<8x8xi1>, vector<8x8xf32>
    %cst_35 = arith.constant dense<0x7F800000> : vector<8xf32>
    %107 = vector.multi_reduction <minimumf>, %106, %cst_35 [1] : vector<8x8xf32> to vector<8xf32>
    %108 = vector.shape_cast %107 : vector<8xf32> to vector<8x1xf32>
    %109 = vector.broadcast %108 : vector<8x1xf32> to vector<8x8xf32>
    %110 = arith.cmpf oeq, %76, %109 : vector<8x8xf32>
    %111 = arith.extui %110 : vector<8x8xi1> to vector<8x8xi32>
    %112 = arith.sitofp %111 : vector<8x8xi32> to vector<8x8xf32>
    %113 = vector.broadcast %cst_29 : f32 to vector<8x8xf32>
    %114 = arith.mulf %112, %113 : vector<8x8xf32>
    %115 = arith.addf %92, %114 : vector<8x8xf32>
    %116 = vector.broadcast %c1_i32 : i32 to vector<8x8xi32>
    %117 = arith.cmpi eq, %75, %116 : vector<8x8xi32>
    %118 = arith.extui %117 : vector<8x8xi1> to vector<8x8xi32>
    %119 = arith.sitofp %118 : vector<8x8xi32> to vector<8x8xf32>
    %120 = vector.broadcast %102 : vector<8x1xf32> to vector<8x8xf32>
    %121 = arith.mulf %119, %120 : vector<8x8xf32>
    %122 = arith.addf %99, %121 : vector<8x8xf32>
    %123 = arith.addf %100, %112 : vector<8x8xf32>
    %c2_i32 = arith.constant 2 : i32
    %cst_36 = arith.constant dense<0x7F800000> : vector<8xf32>
    %124 = vector.multi_reduction <minimumf>, %115, %cst_36 [1] : vector<8x8xf32> to vector<8xf32>
    %125 = vector.shape_cast %124 : vector<8xf32> to vector<8x1xf32>
    %126 = vector.broadcast %125 : vector<8x1xf32> to vector<8x8xf32>
    %127 = arith.cmpf oeq, %115, %126 : vector<8x8xf32>
    %cst_37 = arith.constant 8.000000e+00 : f32
    %128 = vector.broadcast %cst_37 : f32 to vector<8x8xf32>
    %129 = arith.select %127, %76, %128 : vector<8x8xi1>, vector<8x8xf32>
    %cst_38 = arith.constant dense<0x7F800000> : vector<8xf32>
    %130 = vector.multi_reduction <minimumf>, %129, %cst_38 [1] : vector<8x8xf32> to vector<8xf32>
    %131 = vector.shape_cast %130 : vector<8xf32> to vector<8x1xf32>
    %132 = vector.broadcast %131 : vector<8x1xf32> to vector<8x8xf32>
    %133 = arith.cmpf oeq, %76, %132 : vector<8x8xf32>
    %134 = arith.extui %133 : vector<8x8xi1> to vector<8x8xi32>
    %135 = arith.sitofp %134 : vector<8x8xi32> to vector<8x8xf32>
    %136 = vector.broadcast %cst_29 : f32 to vector<8x8xf32>
    %137 = arith.mulf %135, %136 : vector<8x8xf32>
    %138 = arith.addf %115, %137 : vector<8x8xf32>
    %139 = vector.broadcast %c2_i32 : i32 to vector<8x8xi32>
    %140 = arith.cmpi eq, %75, %139 : vector<8x8xi32>
    %141 = arith.extui %140 : vector<8x8xi1> to vector<8x8xi32>
    %142 = arith.sitofp %141 : vector<8x8xi32> to vector<8x8xf32>
    %143 = vector.broadcast %125 : vector<8x1xf32> to vector<8x8xf32>
    %144 = arith.mulf %142, %143 : vector<8x8xf32>
    %145 = arith.addf %122, %144 : vector<8x8xf32>
    %146 = arith.addf %123, %135 : vector<8x8xf32>
    %c3_i32 = arith.constant 3 : i32
    %cst_39 = arith.constant 1.000000e+30 : f32
    %c3_i32_40 = arith.constant 3 : i32
    %cst_41 = arith.constant dense<0x7F800000> : vector<8xf32>
    %147 = vector.multi_reduction <minimumf>, %138, %cst_41 [1] : vector<8x8xf32> to vector<8xf32>
    %148 = vector.shape_cast %147 : vector<8xf32> to vector<8x1xf32>
    %149 = vector.broadcast %148 : vector<8x1xf32> to vector<8x8xf32>
    %150 = arith.cmpf oeq, %138, %149 : vector<8x8xf32>
    %cst_42 = arith.constant 8.000000e+00 : f32
    %151 = vector.broadcast %cst_42 : f32 to vector<8x8xf32>
    %152 = arith.select %150, %76, %151 : vector<8x8xi1>, vector<8x8xf32>
    %cst_43 = arith.constant dense<0x7F800000> : vector<8xf32>
    %153 = vector.multi_reduction <minimumf>, %152, %cst_43 [1] : vector<8x8xf32> to vector<8xf32>
    %154 = vector.shape_cast %153 : vector<8xf32> to vector<8x1xf32>
    %155 = vector.broadcast %154 : vector<8x1xf32> to vector<8x8xf32>
    %156 = arith.cmpf oeq, %76, %155 : vector<8x8xf32>
    %157 = arith.extui %156 : vector<8x8xi1> to vector<8x8xi32>
    %158 = arith.sitofp %157 : vector<8x8xi32> to vector<8x8xf32>
    %159 = vector.broadcast %cst_39 : f32 to vector<8x8xf32>
    %160 = arith.mulf %158, %159 : vector<8x8xf32>
    %161 = arith.addf %138, %160 : vector<8x8xf32>
    %162 = vector.broadcast %c3_i32_40 : i32 to vector<8x8xi32>
    %163 = arith.cmpi eq, %75, %162 : vector<8x8xi32>
    %164 = arith.extui %163 : vector<8x8xi1> to vector<8x8xi32>
    %165 = arith.sitofp %164 : vector<8x8xi32> to vector<8x8xf32>
    %166 = vector.broadcast %148 : vector<8x1xf32> to vector<8x8xf32>
    %167 = arith.mulf %165, %166 : vector<8x8xf32>
    %168 = arith.addf %145, %167 : vector<8x8xf32>
    %c4_i32 = arith.constant 4 : i32
    %cst_44 = arith.constant dense<0x7F800000> : vector<8xf32>
    %169 = vector.multi_reduction <minimumf>, %161, %cst_44 [1] : vector<8x8xf32> to vector<8xf32>
    %170 = vector.shape_cast %169 : vector<8xf32> to vector<8x1xf32>
    %171 = vector.broadcast %170 : vector<8x1xf32> to vector<8x8xf32>
    %172 = arith.cmpf oeq, %161, %171 : vector<8x8xf32>
    %cst_45 = arith.constant 8.000000e+00 : f32
    %173 = vector.broadcast %cst_45 : f32 to vector<8x8xf32>
    %174 = arith.select %172, %76, %173 : vector<8x8xi1>, vector<8x8xf32>
    %cst_46 = arith.constant dense<0x7F800000> : vector<8xf32>
    %175 = vector.multi_reduction <minimumf>, %174, %cst_46 [1] : vector<8x8xf32> to vector<8xf32>
    %176 = vector.shape_cast %175 : vector<8xf32> to vector<8x1xf32>
    %177 = vector.broadcast %176 : vector<8x1xf32> to vector<8x8xf32>
    %178 = arith.cmpf oeq, %76, %177 : vector<8x8xf32>
    %179 = arith.extui %178 : vector<8x8xi1> to vector<8x8xi32>
    %180 = arith.sitofp %179 : vector<8x8xi32> to vector<8x8xf32>
    %181 = vector.broadcast %cst_39 : f32 to vector<8x8xf32>
    %182 = arith.mulf %180, %181 : vector<8x8xf32>
    %183 = arith.addf %161, %182 : vector<8x8xf32>
    %184 = vector.broadcast %c4_i32 : i32 to vector<8x8xi32>
    %185 = arith.cmpi eq, %75, %184 : vector<8x8xi32>
    %186 = arith.extui %185 : vector<8x8xi1> to vector<8x8xi32>
    %187 = arith.sitofp %186 : vector<8x8xi32> to vector<8x8xf32>
    %188 = vector.broadcast %170 : vector<8x1xf32> to vector<8x8xf32>
    %189 = arith.mulf %187, %188 : vector<8x8xf32>
    %190 = arith.addf %168, %189 : vector<8x8xf32>
    %c5_i32 = arith.constant 5 : i32
    %cst_47 = arith.constant dense<0x7F800000> : vector<8xf32>
    %191 = vector.multi_reduction <minimumf>, %183, %cst_47 [1] : vector<8x8xf32> to vector<8xf32>
    %192 = vector.shape_cast %191 : vector<8xf32> to vector<8x1xf32>
    %193 = vector.broadcast %192 : vector<8x1xf32> to vector<8x8xf32>
    %194 = arith.cmpf oeq, %183, %193 : vector<8x8xf32>
    %cst_48 = arith.constant 8.000000e+00 : f32
    %195 = vector.broadcast %cst_48 : f32 to vector<8x8xf32>
    %196 = arith.select %194, %76, %195 : vector<8x8xi1>, vector<8x8xf32>
    %cst_49 = arith.constant dense<0x7F800000> : vector<8xf32>
    %197 = vector.multi_reduction <minimumf>, %196, %cst_49 [1] : vector<8x8xf32> to vector<8xf32>
    %198 = vector.shape_cast %197 : vector<8xf32> to vector<8x1xf32>
    %199 = vector.broadcast %198 : vector<8x1xf32> to vector<8x8xf32>
    %200 = arith.cmpf oeq, %76, %199 : vector<8x8xf32>
    %201 = arith.extui %200 : vector<8x8xi1> to vector<8x8xi32>
    %202 = arith.sitofp %201 : vector<8x8xi32> to vector<8x8xf32>
    %203 = vector.broadcast %cst_39 : f32 to vector<8x8xf32>
    %204 = arith.mulf %202, %203 : vector<8x8xf32>
    %205 = arith.addf %183, %204 : vector<8x8xf32>
    %206 = vector.broadcast %c5_i32 : i32 to vector<8x8xi32>
    %207 = arith.cmpi eq, %75, %206 : vector<8x8xi32>
    %208 = arith.extui %207 : vector<8x8xi1> to vector<8x8xi32>
    %209 = arith.sitofp %208 : vector<8x8xi32> to vector<8x8xf32>
    %210 = vector.broadcast %192 : vector<8x1xf32> to vector<8x8xf32>
    %211 = arith.mulf %209, %210 : vector<8x8xf32>
    %212 = arith.addf %190, %211 : vector<8x8xf32>
    %c6_i32 = arith.constant 6 : i32
    %cst_50 = arith.constant dense<0x7F800000> : vector<8xf32>
    %213 = vector.multi_reduction <minimumf>, %205, %cst_50 [1] : vector<8x8xf32> to vector<8xf32>
    %214 = vector.shape_cast %213 : vector<8xf32> to vector<8x1xf32>
    %215 = vector.broadcast %214 : vector<8x1xf32> to vector<8x8xf32>
    %216 = arith.cmpf oeq, %205, %215 : vector<8x8xf32>
    %cst_51 = arith.constant 8.000000e+00 : f32
    %217 = vector.broadcast %cst_51 : f32 to vector<8x8xf32>
    %218 = arith.select %216, %76, %217 : vector<8x8xi1>, vector<8x8xf32>
    %cst_52 = arith.constant dense<0x7F800000> : vector<8xf32>
    %219 = vector.multi_reduction <minimumf>, %218, %cst_52 [1] : vector<8x8xf32> to vector<8xf32>
    %220 = vector.shape_cast %219 : vector<8xf32> to vector<8x1xf32>
    %221 = vector.broadcast %220 : vector<8x1xf32> to vector<8x8xf32>
    %222 = arith.cmpf oeq, %76, %221 : vector<8x8xf32>
    %223 = arith.extui %222 : vector<8x8xi1> to vector<8x8xi32>
    %224 = arith.sitofp %223 : vector<8x8xi32> to vector<8x8xf32>
    %225 = vector.broadcast %cst_39 : f32 to vector<8x8xf32>
    %226 = arith.mulf %224, %225 : vector<8x8xf32>
    %227 = arith.addf %205, %226 : vector<8x8xf32>
    %228 = vector.broadcast %c6_i32 : i32 to vector<8x8xi32>
    %229 = arith.cmpi eq, %75, %228 : vector<8x8xi32>
    %230 = arith.extui %229 : vector<8x8xi1> to vector<8x8xi32>
    %231 = arith.sitofp %230 : vector<8x8xi32> to vector<8x8xf32>
    %232 = vector.broadcast %214 : vector<8x1xf32> to vector<8x8xf32>
    %233 = arith.mulf %231, %232 : vector<8x8xf32>
    %234 = arith.addf %212, %233 : vector<8x8xf32>
    %c7_i32 = arith.constant 7 : i32
    %cst_53 = arith.constant dense<0x7F800000> : vector<8xf32>
    %235 = vector.multi_reduction <minimumf>, %227, %cst_53 [1] : vector<8x8xf32> to vector<8xf32>
    %236 = vector.shape_cast %235 : vector<8xf32> to vector<8x1xf32>
    %237 = vector.broadcast %236 : vector<8x1xf32> to vector<8x8xf32>
    %238 = arith.cmpf oeq, %227, %237 : vector<8x8xf32>
    %cst_54 = arith.constant 8.000000e+00 : f32
    %239 = vector.broadcast %cst_54 : f32 to vector<8x8xf32>
    %240 = arith.select %238, %76, %239 : vector<8x8xi1>, vector<8x8xf32>
    %cst_55 = arith.constant dense<0x7F800000> : vector<8xf32>
    %241 = vector.multi_reduction <minimumf>, %240, %cst_55 [1] : vector<8x8xf32> to vector<8xf32>
    %242 = vector.shape_cast %241 : vector<8xf32> to vector<8x1xf32>
    %243 = vector.broadcast %242 : vector<8x1xf32> to vector<8x8xf32>
    %244 = arith.cmpf oeq, %76, %243 : vector<8x8xf32>
    %245 = arith.extui %244 : vector<8x8xi1> to vector<8x8xi32>
    %246 = arith.sitofp %245 : vector<8x8xi32> to vector<8x8xf32>
    %247 = vector.broadcast %cst_39 : f32 to vector<8x8xf32>
    %248 = arith.mulf %246, %247 : vector<8x8xf32>
    %249 = arith.addf %227, %248 : vector<8x8xf32>
    %250 = vector.broadcast %c7_i32 : i32 to vector<8x8xi32>
    %251 = arith.cmpi eq, %75, %250 : vector<8x8xi32>
    %252 = arith.extui %251 : vector<8x8xi1> to vector<8x8xi32>
    %253 = arith.sitofp %252 : vector<8x8xi32> to vector<8x8xf32>
    %254 = vector.broadcast %236 : vector<8x1xf32> to vector<8x8xf32>
    %255 = arith.mulf %253, %254 : vector<8x8xf32>
    %256 = arith.addf %234, %255 : vector<8x8xf32>
    %c5_i32_56 = arith.constant 5 : i32
    %257 = math.sqrt %256 : vector<8x8xf32>
    %cst_57 = arith.constant 0.000000e+00 : f32
    %258 = vector.broadcast %cst_57 : f32 to vector<8x8xf32>
    %259 = arith.subf %258, %257 : vector<8x8xf32>
    %260 = math.exp %259 : vector<8x8xf32>
    %261 = arith.mulf %260, %146 : vector<8x8xf32>
    %262 = arith.mulf %261, %74 : vector<8x8xf32>
    %263 = arith.mulf %69, %262 : vector<8x8xf32>
    %cst_58 = arith.constant dense<0.000000e+00> : vector<8xf32>
    %264 = vector.multi_reduction <add>, %263, %cst_58 [1] : vector<8x8xf32> to vector<8xf32>
    %265 = vector.shape_cast %264 : vector<8xf32> to vector<8x1xf32>
    %cst_59 = arith.constant dense<0.000000e+00> : vector<1xf32>
    %266 = vector.multi_reduction <add>, %265, %cst_59 [0] : vector<8x1xf32> to vector<1xf32>
    %267 = vector.shape_cast %266 : vector<1xf32> to vector<1x1xf32>
    %cst_60 = arith.constant 5.000000e-04 : f32
    %268 = vector.broadcast %cst_60 : f32 to vector<1x1xf32>
    %269 = arith.mulf %268, %267 : vector<1x1xf32>
    %270 = arith.addf %30, %269 : vector<1x1xf32>
    %c0_61 = arith.constant 0 : index
    %c0_62 = arith.constant 0 : index
    %271 = vector.load %arg6[%c0_61, %c0_62] : memref<1x1xf32, #tpu.memory_space<vmem>>, vector<1x1xf32>
    tpu.vector_store %arg6[%c0_61, %c0_62], %270 {strides = array<i32>} : memref<1x1xf32, #tpu.memory_space<vmem>>, vector<1x1xf32>,
    return
  }
}

</mosaic_0001>

<bundles_post_ra>
// kernel: tpu_custom_call.1
= control target key start
LH: loop header
LB: loop body
LE: loop exit
PB: predicated region body
PF: predicated region fallthrough
CT: control target
= control target key end

     0   :  { %s2201_s0 = inlined_call_operand.vmem [shape: f32[8,1024], index: 0, kind: input, shape index: {}]   ;;  %s2202_s1 = inlined_call_operand.vmem [shape: f32[1024,10], index: 1, kind: input, shape index: {}]   ;;  %s2203_s2 = inlined_call_operand.vmem [shape: f32[1,10], index: 2, kind: input, shape index: {}]   ;;  %s2204_s3 = inlined_call_operand.vmem [shape: s32[8,1], index: 3, kind: input, shape index: {}]   ;;  %s2205_s4 = inlined_call_operand.vmem [shape: s32[1,8], index: 4, kind: input, shape index: {}]   ;;  %s2206_s5 = inlined_call_operand.vmem [shape: f32[8,10], index: 5, kind: input, shape index: {}]   ;;  %s2207_s6 = inlined_call_operand.hbm [shape: f32[1,1], index: 6, kind: output, shape index: {}]  }
   0x1   :  { %v48_v0 = vld [vmem:[%s2202_s1 + $0x80] sm:$0xff]  ;;  %v49_v1 = vld [vmem:[%s2202_s1 + $0x88] sm:$0xff]  ;;  %v50_v11 = vld [vmem:[%s2202_s1 + $0x90] sm:$0xff] }
   0x2   :  { %v32_v2 = vld [vmem:[%s2202_s1] sm:$0xff]  ;;  %v1386_v3 = vpack.c.bf16 %v49_v1, %v48_v0  ;;  %v33_v4 = vld [vmem:[%s2202_s1 + $0x8] sm:$0xff]  ;;  %v51_v13 = vld [vmem:[%s2202_s1 + $0x98] sm:$0xff] }
   0x3   :  { %v80_v5 = vld [vmem:[%s2202_s1 + $0x180] sm:$0xff]  ;;  %v81_v6 = vld [vmem:[%s2202_s1 + $0x188] sm:$0xff]  ;;  %v1388_v7 = vpack.c.bf16 %v33_v4, %v32_v2  ;;  %v34_v14 = vld [vmem:[%s2202_s1 + $0x10] sm:$0xff]  ;;  %v1390_v16 = vpack.c.bf16 %v51_v13, %v50_v11 }
   0x4   :  { %v1418_v8 = vpack.c.bf16 %v81_v6, %v80_v5  ;;  %v64_v9 = vld [vmem:[%s2202_s1 + $0x100] sm:$0xff]  ;;  %v65_v10 = vld [vmem:[%s2202_s1 + $0x108] sm:$0xff]  ;;  %1387 = vmatprep.subr.bf16.mxu0 %v1386_v3  ;;  %v35_v15 = vld [vmem:[%s2202_s1 + $0x18] sm:$0xff] }
   0x5   :  { %v1420_v12 = vpack.c.bf16 %v65_v10, %v64_v9  ;;  %1389 = vmatpush3.bf16.msra.mxu0 %v1388_v7  ;;  %v1392_v17 = vpack.c.bf16 %v35_v15, %v34_v14  ;;  %v82_v18 = vld [vmem:[%s2202_s1 + $0x190] sm:$0xff]  ;;  %v83_v19 = vld [vmem:[%s2202_s1 + $0x198] sm:$0xff]  ;;  %v52_v23 = vld [vmem:[%s2202_s1 + $0xa0] sm:$0xff] }
   0x6   :  { %1419 = vmatprep.subr.bf16.mxu1 %v1418_v8  ;;  %v66_v20 = vld [vmem:[%s2202_s1 + $0x110] sm:$0xff]  ;;  %v1422_v21 = vpack.c.bf16 %v83_v19, %v82_v18  ;;  %v67_v22 = vld [vmem:[%s2202_s1 + $0x118] sm:$0xff]  ;;  %v53_v24 = vld [vmem:[%s2202_s1 + $0xa8] sm:$0xff]  ;;  %1391 = vmatprep.subr.bf16.mxu0 %v1390_v16 }
   0x7   :  { %1421 = vmatpush3.bf16.msra.mxu1 %v1420_v12  ;;  %v1424_v25 = vpack.c.bf16 %v67_v22, %v66_v20  ;;  %v1394_v26 = vpack.c.bf16 %v53_v24, %v52_v23  ;;  %v36_v27 = vld [vmem:[%s2202_s1 + $0x20] sm:$0xff]  ;;  %v37_v28 = vld [vmem:[%s2202_s1 + $0x28] sm:$0xff]  ;;  %v54_v35 = vld [vmem:[%s2202_s1 + $0xb0] sm:$0xff] }
   0x8   :  { %v84_v29 = vld [vmem:[%s2202_s1 + $0x1a0] sm:$0xff]  ;;  %1423 = vmatprep.subr.bf16.mxu1 %v1422_v21  ;;  %v85_v30 = vld [vmem:[%s2202_s1 + $0x1a8] sm:$0xff]  ;;  %v1396_v33 = vpack.c.bf16 %v37_v28, %v36_v27  ;;  %v55_v36 = vld [vmem:[%s2202_s1 + $0xb8] sm:$0xff] }
   0x9   :  { %v68_v31 = vld [vmem:[%s2202_s1 + $0x120] sm:$0xff]  ;;  %v69_v32 = vld [vmem:[%s2202_s1 + $0x128] sm:$0xff]  ;;  %1393 = vmatpush3.bf16.msra.mxu0 %v1392_v17  ;;  %v1426_v34 = vpack.c.bf16 %v85_v30, %v84_v29  ;;  %v38_v37 = vld [vmem:[%s2202_s1 + $0x30] sm:$0xff]  ;;  %v1398_v39 = vpack.c.bf16 %v55_v36, %v54_v35 }
   0xa   :  { %1395 = vmatprep.subr.bf16.mxu0 %v1394_v26  ;;  %v1428_v38 = vpack.c.bf16 %v69_v32, %v68_v31  ;;  %v39_v40 = vld [vmem:[%s2202_s1 + $0x38] sm:$0xff]  ;;  %v86_v41 = vld [vmem:[%s2202_s1 + $0x1b0] sm:$0xff]  ;;  %v56_v46 = vld [vmem:[%s2202_s1 + $0xc0] sm:$0xff] }
   0xb   :  { %1425 = vmatpush3.bf16.msra.mxu1 %v1424_v25  ;;  %v87_v42 = vld [vmem:[%s2202_s1 + $0x1b8] sm:$0xff]  ;;  %v70_v44 = vld [vmem:[%s2202_s1 + $0x130] sm:$0xff]  ;;  %v57_v47 = vld [vmem:[%s2202_s1 + $0xc8] sm:$0xff]  ;;  %v1400_v48 = vpack.c.bf16 %v39_v40, %v38_v37 }
   0xc   :  { %1427 = vmatprep.subr.bf16.mxu1 %v1426_v34  ;;  %v1430_v43 = vpack.c.bf16 %v87_v42, %v86_v41  ;;  %v71_v45 = vld [vmem:[%s2202_s1 + $0x138] sm:$0xff]  ;;  %v88_v49 = vld [vmem:[%s2202_s1 + $0x1c0] sm:$0xff]  ;;  %v89_v50 = vld [vmem:[%s2202_s1 + $0x1c8] sm:$0xff]  ;;  %v1402_v52 = vpack.c.bf16 %v57_v47, %v56_v46 }
   0xd   :  { %1397 = vmatpush3.bf16.msra.mxu0 %v1396_v33  ;;  %v1432_v51 = vpack.c.bf16 %v71_v45, %v70_v44  ;;  %v40_v53 = vld [vmem:[%s2202_s1 + $0x40] sm:$0xff]  ;;  %v41_v54 = vld [vmem:[%s2202_s1 + $0x48] sm:$0xff]  ;;  %v1434_v56 = vpack.c.bf16 %v89_v50, %v88_v49  ;;  %v58_v58 = vld [vmem:[%s2202_s1 + $0xd0] sm:$0xff] }
   0xe   :  { %1399 = vmatprep.subr.bf16.mxu0 %v1398_v39  ;;  %v72_v55 = vld [vmem:[%s2202_s1 + $0x140] sm:$0xff]  ;;  %v73_v57 = vld [vmem:[%s2202_s1 + $0x148] sm:$0xff]  ;;  %v59_v59 = vld [vmem:[%s2202_s1 + $0xd8] sm:$0xff]  ;;  %v1404_v62 = vpack.c.bf16 %v41_v54, %v40_v53 }
   0xf   :  { %1429 = vmatpush3.bf16.msra.mxu1 %v1428_v38  ;;  %v90_v60 = vld [vmem:[%s2202_s1 + $0x1d0] sm:$0xff]  ;;  %v91_v61 = vld [vmem:[%s2202_s1 + $0x1d8] sm:$0xff]  ;;  %v1436_v63 = vpack.c.bf16 %v73_v57, %v72_v55  ;;  %v1406_v0 = vpack.c.bf16 %v59_v59, %v58_v58  ;;  %v60_v6 = vld [vmem:[%s2202_s1 + $0xe0] sm:$0xff] }
  0x10   :  { %1431 = vmatprep.subr.bf16.mxu1 %v1430_v43  ;;  %v42_v1 = vld [vmem:[%s2202_s1 + $0x50] sm:$0xff]  ;;  %v43_v2 = vld [vmem:[%s2202_s1 + $0x58] sm:$0xff]  ;;  %v1438_v4 = vpack.c.bf16 %v91_v61, %v90_v60  ;;  %v61_v7 = vld [vmem:[%s2202_s1 + $0xe8] sm:$0xff] }
  0x11   :  { %1401 = vmatpush3.bf16.msra.mxu0 %v1400_v48  ;;  %v74_v3 = vld [vmem:[%s2202_s1 + $0x150] sm:$0xff]  ;;  %v75_v5 = vld [vmem:[%s2202_s1 + $0x158] sm:$0xff]  ;;  %v92_v8 = vld [vmem:[%s2202_s1 + $0x1e0] sm:$0xff]  ;;  %v1408_v10 = vpack.c.bf16 %v43_v2, %v42_v1  ;;  %v1410_v14 = vpack.c.bf16 %v61_v7, %v60_v6 }
  0x12   :  { %1403 = vmatprep.subr.bf16.mxu0 %v1402_v52  ;;  %v93_v9 = vld [vmem:[%s2202_s1 + $0x1e8] sm:$0xff]  ;;  %v44_v11 = vld [vmem:[%s2202_s1 + $0x60] sm:$0xff]  ;;  %v1440_v13 = vpack.c.bf16 %v75_v5, %v74_v3  ;;  %v62_v19 = vld [vmem:[%s2202_s1 + $0xf0] sm:$0xff] }
  0x13   :  { %1433 = vmatpush3.bf16.msra.mxu1 %v1432_v51  ;;  %v1762_v12 = vld [vmem:[%s2201_s0 + $0x8] sm:$0xff]  ;;  %v76_v16 = vld [vmem:[%s2202_s1 + $0x160] sm:$0xff]  ;;  %v1442_v18 = vpack.c.bf16 %v93_v9, %v92_v8  ;;  %v63_v20 = vld [vmem:[%s2202_s1 + $0xf8] sm:$0xff] }
  0x14   :  { %1435 = vmatprep.subr.bf16.mxu1 %v1434_v56  ;;  %v45_v15 = vld [vmem:[%s2202_s1 + $0x68] sm:$0xff]  ;;  %234 = vmatprep.mubr.f32.mxu0 %v1762_v12  ;;  %v1783_v21 = vld [vmem:[%s2201_s0 + $0x18] sm:$0xff]  ;;  %v94_v22 = vld [vmem:[%s2202_s1 + $0x1f0] sm:$0xff]  ;;  %v1414_v26 = vpack.c.bf16 %v63_v20, %v62_v19 }
  0x15   :  { %1405 = vmatpush3.bf16.msra.mxu0 %v1404_v62  ;;  %v77_v17 = vld [vmem:[%s2202_s1 + $0x168] sm:$0xff]  ;;  %v95_v23 = vld [vmem:[%s2202_s1 + $0x1f8] sm:$0xff]  ;;  %304 = vmatprep.mubr.f32.mxu1 %v1783_v21  ;;  %v1412_v24 = vpack.c.bf16 %v45_v15, %v44_v11  ;;  %v46_v27 = vld [vmem:[%s2202_s1 + $0x70] sm:$0xff] }
  0x16   :  { %1407 = vmatprep.subr.bf16.mxu0 %v1406_v0  ;;  %v1444_v25 = vpack.c.bf16 %v77_v17, %v76_v16  ;;  %v47_v28 = vld [vmem:[%s2202_s1 + $0x78] sm:$0xff]  ;;  %v78_v29 = vld [vmem:[%s2202_s1 + $0x170] sm:$0xff]  ;;  %v1446_v30 = vpack.c.bf16 %v95_v23, %v94_v22  ;;  %v112_v32 = vld [vmem:[%s2202_s1 + $0x280] sm:$0xff] }
  0x17   :  { %1437 = vmatpush3.bf16.msra.mxu1 %v1436_v63  ;;  %v79_v31 = vld [vmem:[%s2202_s1 + $0x178] sm:$0xff]  ;;  %v113_v33 = vld [vmem:[%s2202_s1 + $0x288] sm:$0xff]  ;;  %v144_v34 = vld [vmem:[%s2202_s1 + $0x380] sm:$0xff]  ;;  %v1416_v36 = vpack.c.bf16 %v47_v28, %v46_v27 }
  0x18   :  { %1439 = vmatprep.subr.bf16.mxu1 %v1438_v4  ;;  %v145_v35 = vld [vmem:[%s2202_s1 + $0x388] sm:$0xff]  ;;  %v1448_v37 = vpack.c.bf16 %v79_v31, %v78_v29  ;;  %v1450_v38 = vpack.c.bf16 %v113_v33, %v112_v32  ;;  %v96_v39 = vld [vmem:[%s2202_s1 + $0x200] sm:$0xff]  ;;  %v114_v44 = vld [vmem:[%s2202_s1 + $0x290] sm:$0xff] }
  0x19   :  { %1409 = vmatpush3.bf16.msra.mxu0 %v1408_v10  ;;  %v97_v40 = vld [vmem:[%s2202_s1 + $0x208] sm:$0xff]  ;;  %v128_v41 = vld [vmem:[%s2202_s1 + $0x300] sm:$0xff]  ;;  %v1482_v42 = vpack.c.bf16 %v145_v35, %v144_v34  ;;  %v115_v45 = vld [vmem:[%s2202_s1 + $0x298] sm:$0xff] }
  0x1a   :  { %1411 = vmatprep.subr.bf16.mxu0 %v1410_v14  ;;  %v129_v43 = vld [vmem:[%s2202_s1 + $0x308] sm:$0xff]  ;;  %v146_v46 = vld [vmem:[%s2202_s1 + $0x390] sm:$0xff]  ;;  %v147_v47 = vld [vmem:[%s2202_s1 + $0x398] sm:$0xff]  ;;  %v1452_v49 = vpack.c.bf16 %v97_v40, %v96_v39  ;;  %v1454_v52 = vpack.c.bf16 %v115_v45, %v114_v44 }
  0x1b   :  { %1441 = vmatpush3.bf16.msra.mxu1 %v1440_v13  ;;  %v1843_v48 = vld [vmem:[%s2201_s0] sm:$0xff]  ;;  %v1848_v50 = vld [vmem:[%s2201_s0 + $0x10] sm:$0xff]  ;;  %v1484_v51 = vpack.c.bf16 %v129_v43, %v128_v41  ;;  %v99_v54 = vld [vmem:[%s2202_s1 + $0x218] sm:$0xff]  ;;  %v1486_v56 = vpack.c.bf16 %v147_v47, %v146_v46 }
  0x1c   :  { %1443 = vmatprep.subr.bf16.mxu1 %v1442_v18  ;;  %v98_v53 = vld [vmem:[%s2202_s1 + $0x210] sm:$0xff]  ;;  %v131_v57 = vld [vmem:[%s2202_s1 + $0x318] sm:$0xff]  ;;  %v116_v58 = vld [vmem:[%s2202_s1 + $0x2a0] sm:$0xff] }
  0x1d   :  { %1413 = vmatpush3.bf16.msra.mxu0 %v1412_v24  ;;  %v130_v55 = vld [vmem:[%s2202_s1 + $0x310] sm:$0xff]  ;;  %v117_v59 = vld [vmem:[%s2202_s1 + $0x2a8] sm:$0xff]  ;;  %v148_v60 = vld [vmem:[%s2202_s1 + $0x3a0] sm:$0xff]  ;;  %v1456_v62 = vpack.c.bf16 %v99_v54, %v98_v53 }
  0x1e   :  { %1415 = vmatprep.subr.bf16.mxu0 %v1414_v26  ;;  %v149_v61 = vld [vmem:[%s2202_s1 + $0x3a8] sm:$0xff]  ;;  %v1488_v63 = vpack.c.bf16 %v131_v57, %v130_v55  ;;  %v1458_v0 = vpack.c.bf16 %v117_v59, %v116_v58  ;;  %v100_v1 = vld [vmem:[%s2202_s1 + $0x220] sm:$0xff]  ;;  %v118_v6 = vld [vmem:[%s2202_s1 + $0x2b0] sm:$0xff] }
  0x1f   :  { %1445 = vmatpush3.bf16.msra.mxu1 %v1444_v25  ;;  %v101_v2 = vld [vmem:[%s2202_s1 + $0x228] sm:$0xff]  ;;  %v132_v3 = vld [vmem:[%s2202_s1 + $0x320] sm:$0xff]  ;;  %v1490_v4 = vpack.c.bf16 %v149_v61, %v148_v60  ;;  %v119_v7 = vld [vmem:[%s2202_s1 + $0x2b8] sm:$0xff] }
  0x20   :  { %1447 = vmatprep.subr.bf16.mxu1 %v1446_v30  ;;  %v133_v5 = vld [vmem:[%s2202_s1 + $0x328] sm:$0xff]  ;;  %v150_v8 = vld [vmem:[%s2202_s1 + $0x3b0] sm:$0xff]  ;;  %v151_v9 = vld [vmem:[%s2202_s1 + $0x3b8] sm:$0xff]  ;;  %v1460_v10 = vpack.c.bf16 %v101_v2, %v100_v1  ;;  %v1462_v13 = vpack.c.bf16 %v119_v7, %v118_v6 }
  0x21   :  { %1417 = vmatpush3.bf16.msra.mxu0 %v1416_v36  ;;  %v1492_v11 = vpack.c.bf16 %v133_v5, %v132_v3  ;;  %v102_v14 = vld [vmem:[%s2202_s1 + $0x230] sm:$0xff]  ;;  %v103_v15 = vld [vmem:[%s2202_s1 + $0x238] sm:$0xff]  ;;  %v1494_v17 = vpack.c.bf16 %v151_v9, %v150_v8  ;;  %v120_v19 = vld [vmem:[%s2202_s1 + $0x2c0] sm:$0xff] }
  0x22   :  { %1451 = vmatprep.subr.bf16.mxu0 %v1450_v38  ;;  %v134_v16 = vld [vmem:[%s2202_s1 + $0x330] sm:$0xff]  ;;  %v135_v18 = vld [vmem:[%s2202_s1 + $0x338] sm:$0xff]  ;;  %v121_v20 = vld [vmem:[%s2202_s1 + $0x2c8] sm:$0xff]  ;;  %v1464_v25 = vpack.c.bf16 %v103_v15, %v102_v14 }
  0x23   :  { %1449 = vmatpush3.bf16.msra.mxu1 %v1448_v37  ;;  %v152_v22 = vld [vmem:[%s2202_s1 + $0x3c0] sm:$0xff]  ;;  %v153_v23 = vld [vmem:[%s2202_s1 + $0x3c8] sm:$0xff]  ;;  %v1936_v27 = vld [vmem:[%s2201_s0 + $0x38] sm:$0xff]  ;;  %v1496_v28 = vpack.c.bf16 %v135_v18, %v134_v16  ;;  %v1466_v29 = vpack.c.bf16 %v121_v20, %v120_v19 }
  0x24   :  { %1483 = vmatprep.subr.bf16.mxu1 %v1482_v42  ;;  %235 = vmatmul.mubr.f32.vlgmr.msra.gmra.mrb[0].mxu0 %v1843_v48  ;;  %v1927_v24 = vld [vmem:[%s2201_s0 + $0x28] sm:$0xff]  ;;  %v104_v26 = vld [vmem:[%s2202_s1 + $0x240] sm:$0xff] }
  0x25   :  { %1453 = vmatpush3.bf16.msra.mxu0 %v1452_v49  ;;  %374 = vmatprep.mubr.f32.mxu0 %v1927_v24  ;;  %v105_v30 = vld [vmem:[%s2202_s1 + $0x248] sm:$0xff]  ;;  %v136_v31 = vld [vmem:[%s2202_s1 + $0x340] sm:$0xff] }
  0x26   :  { %305 = vmatmul.mubr.f32.vlgmr.msra.gmra.mrb[0].mxu1 %v1848_v50  ;;  %1455 = vmatprep.subr.bf16.mxu0 %v1454_v52 }
  0x27   :  { %1485 = vmatpush3.bf16.msra.mxu1 %v1484_v51 }
  0x28   :  { %1487 = vmatprep.subr.bf16.mxu1 %v1486_v56 }
  0x29   :  { %1457 = vmatpush3.bf16.msra.mxu0 %v1456_v62 }
  0x2a   :  { %1459 = vmatprep.subr.bf16.mxu0 %v1458_v0 }
  0x2b   :  { %1489 = vmatpush3.bf16.msra.mxu1 %v1488_v63 }
  0x2c   :  { %1491 = vmatprep.subr.bf16.mxu1 %v1490_v4 }
  0x2d   :  { %1461 = vmatpush3.bf16.msra.mxu0 %v1460_v10 }
  0x2e   :  { %1463 = vmatprep.subr.bf16.mxu0 %v1462_v13 }
  0x2f   :  { %1493 = vmatpush3.bf16.msra.mxu1 %v1492_v11 }
  0x30   :  { %11 = vsyncpa [#allocation3], 0  ;;  %1495 = vmatprep.subr.bf16.mxu1 %v1494_v17  ;;  %v1498_v32 = vpack.c.bf16 %v153_v23, %v152_v22  ;;  %v137_v33 = vld [vmem:[%s2202_s1 + $0x348] sm:$0xff]  ;;  %v122_v34 = vld [vmem:[%s2202_s1 + $0x2d0] sm:$0xff]  ;;  %444 = vmatprep.mubr.f32.mxu1 %v1936_v27  ;;  %v1468_v38 = vpack.c.bf16 %v105_v30, %v104_v26  ;;  %vm1561_vm0 = vmmov 0   ;;  %vm769_vm2 = vcmask 64512  }
  0x31   :  { %v123_v35 = vld [vmem:[%s2202_s1 + $0x2d8] sm:$0xff]  ;;  %v154_v36 = vld [vmem:[%s2202_s1 + $0x3d0] sm:$0xff]  ;;  %1465 = vmatpush3.bf16.msra.mxu0 %v1464_v25  ;;  %v1500_v39 = vpack.c.bf16 %v137_v33, %v136_v31  ;;  %v124_v46 = vld [vmem:[%s2202_s1 + $0x2e0] sm:$0xff]  ;;  %vm450_vm14 = vcmask 80896  }
  0x32   :  { %v155_v37 = vld [vmem:[%s2202_s1 + $0x3d8] sm:$0xff]  ;;  %1467 = vmatprep.subr.bf16.mxu0 %v1466_v29  ;;  %v1470_v40 = vpack.c.bf16 %v123_v35, %v122_v34  ;;  %v106_v41 = vld [vmem:[%s2202_s1 + $0x250] sm:$0xff]  ;;  %v125_v47 = vld [vmem:[%s2202_s1 + $0x2e8] sm:$0xff] }
  0x33   :  { %1497 = vmatpush3.bf16.msra.mxu1 %v1496_v28  ;;  %v107_v42 = vld [vmem:[%s2202_s1 + $0x258] sm:$0xff]  ;;  %v138_v43 = vld [vmem:[%s2202_s1 + $0x350] sm:$0xff]  ;;  %v1502_v44 = vpack.c.bf16 %v155_v37, %v154_v36  ;;  %v156_v49 = vld [vmem:[%s2202_s1 + $0x3e0] sm:$0xff]  ;;  %v1474_v54 = vpack.c.bf16 %v125_v47, %v124_v46  ;;  %v463_v28 = vlaneseq  ;;  %v1562_v36 = vmov 1.0  }
  0x34   :  { %1499 = vmatprep.subr.bf16.mxu1 %v1498_v32  ;;  %v139_v45 = vld [vmem:[%s2202_s1 + $0x358] sm:$0xff]  ;;  %v157_v51 = vld [vmem:[%s2202_s1 + $0x3e8] sm:$0xff]  ;;  %v1472_v52 = vpack.c.bf16 %v107_v42, %v106_v41  ;;  %v108_v55 = vld [vmem:[%s2202_s1 + $0x260] sm:$0xff] }
  0x35   :  { %1469 = vmatpush3.bf16.msra.mxu0 %v1468_v38  ;;  %v1504_v53 = vpack.c.bf16 %v139_v45, %v138_v43  ;;  %v109_v56 = vld [vmem:[%s2202_s1 + $0x268] sm:$0xff]  ;;  %v140_v57 = vld [vmem:[%s2202_s1 + $0x360] sm:$0xff]  ;;  %v1506_v58 = vpack.c.bf16 %v157_v51, %v156_v49  ;;  %v126_v60 = vld [vmem:[%s2202_s1 + $0x2f0] sm:$0xff]  ;;  %v2046_v29 = vand.u32 127, %v463_v28  ;;  %v2048_v30 = vshrl.u32 %v463_v28, 7 }
  0x36   :  { %1471 = vmatprep.subr.bf16.mxu0 %v1470_v40  ;;  %v141_v59 = vld [vmem:[%s2202_s1 + $0x368] sm:$0xff]  ;;  %v127_v61 = vld [vmem:[%s2202_s1 + $0x2f8] sm:$0xff]  ;;  %v158_v62 = vld [vmem:[%s2202_s1 + $0x3f0] sm:$0xff]  ;;  %v1476_v0 = vpack.c.bf16 %v109_v56, %v108_v55 }
  0x37   :  { %1501 = vmatpush3.bf16.msra.mxu1 %v1500_v39  ;;  %v159_v63 = vld [vmem:[%s2202_s1 + $0x3f8] sm:$0xff]  ;;  %v1508_v1 = vpack.c.bf16 %v141_v59, %v140_v57  ;;  %v1478_v2 = vpack.c.bf16 %v127_v61, %v126_v60  ;;  %v110_v3 = vld [vmem:[%s2202_s1 + $0x270] sm:$0xff]  ;;  %v28_v10 = vld [vmem:[%s2201_s0 + $0x20] sm:$0xff]  ;;  %vm765_vm1 = vcmp.eq.s32.totalorder %v2048_v30, %v2046_v29  ;;  %v848_v37 = vsub.s32 0, %v2048_v30 }
  0x38   :  { %1503 = vmatprep.subr.bf16.mxu1 %v1502_v44  ;;  %v111_v4 = vld [vmem:[%s2202_s1 + $0x278] sm:$0xff]  ;;  %v1510_v5 = vpack.c.bf16 %v159_v63, %v158_v62  ;;  %v142_v6 = vld [vmem:[%s2202_s1 + $0x370] sm:$0xff]  ;;  %v2067_v47 = vcvt.s32.f32 %v2046_v29 }
  0x39   :  { %1473 = vmatpush3.bf16.msra.mxu0 %v1472_v52  ;;  %v143_v7 = vld [vmem:[%s2202_s1 + $0x378] sm:$0xff]  ;;  %v1480_v8 = vpack.c.bf16 %v111_v4, %v110_v3  ;;  %v30_v11 = vld [vmem:[%s2201_s0 + $0x30] sm:$0xff] }
  0x3a   :  { %1475 = vmatprep.subr.bf16.mxu0 %v1474_v54  ;;  %v1512_v9 = vpack.c.bf16 %v143_v7, %v142_v6 }
  0x3b   :  { %1505 = vmatpush3.bf16.msra.mxu1 %v1504_v53 }
  0x3c   :  { %1507 = vmatprep.subr.bf16.mxu1 %v1506_v58 }
  0x3d   :  { %1477 = vmatpush3.bf16.msra.mxu0 %v1476_v0 }
  0x3e   :  { %1479 = vmatprep.subr.bf16.mxu0 %v1478_v2 }
  0x3f   :  { %1509 = vmatpush3.bf16.msra.mxu1 %v1508_v1 }
  0x40   :  { %1511 = vmatprep.subr.bf16.mxu1 %v1510_v5 }
  0x41   :  { %1481 = vmatpush3.bf16.msra.mxu0 %v1480_v8 }
  0x42   :  { %483 = vmatprep.subr.mxu0 %v1762_v12 }
  0x43   :  { %1513 = vmatpush3.bf16.msra.mxu1 %v1512_v9 }
  0x44   :  { %375 = vmatmul.mubr.f32.vlgmr.msra.gmra.mrb[2].mxu0 %v28_v10 }
  0x45   :  { %547 = vmatprep.mubr.f32.mxu0 %v1762_v12  ;;  %v1560_v12 = vmov 0.0  }
  0x46   :  { %445 = vmatmul.mubr.f32.vlgmr.msra.gmra.mrb[2].mxu1 %v30_v11  ;;  %1371 = vmatprep.subr.mxu1 %v1560_v12  ;;  %v2053_v31 = vsel %vm765_vm1, 1.0, %v1560_v12 }
  0x47   :  { %1373 = vmatprep.mubr.msk.f32.mxu1 %vm1561_vm0, %v1560_v12 }
  0x4a   :  { %484 = vmatpush1.xpose.msra.mxu0 %v1843_v48 }
  0x4b   :  { %553 = vmatprep.subr.mxu0 %v1783_v21 }
  0x4d   :  { %548 = vmatmul.mubr.f32.vlgmr.msra.gmra.mrb[4].mxu0 %v1843_v48  ;;  %v1201_v48 = vld [vmem:[%s2203_s2] ss:$0 sm:$0xff] }
  0x4e   :  { %554 = vmatpush1.xpose.msra.mxu0 %v1848_v50  ;;  %617 = vmatprep.mubr.f32.mxu0 %v1783_v21 }
  0x4f   :  { %623 = vmatprep.subr.mxu0 %v1927_v24 }
  0x55   :  { %618 = vmatmul.mubr.f32.vlgmr.msra.gmra.mrb[4].mxu0 %v1848_v50 }
  0x56   :  { %624 = vmatpush1.xpose.msra.mxu0 %v28_v10  ;;  %687 = vmatprep.mubr.f32.mxu0 %v1927_v24 }
  0x57   :  { %693 = vmatprep.subr.mxu0 %v1936_v27 }
  0x5d   :  { %688 = vmatmul.mubr.f32.vlgmr.msra.gmra.mrb[4].mxu0 %v28_v10 }
  0x5e   :  { %694 = vmatpush1.xpose.msra.mxu0 %v30_v11  ;;  %757 = vmatprep.mubr.f32.mxu0 %v1936_v27 }
  0x65   :  { %758 = vmatmul.mubr.f32.vlgmr.msra.gmra.mrb[4].mxu0 %v30_v11 }
  0xf7   :  { %v1257_v21 = vpop.f32.mrb[0].mxu0 }
  0xf8   :  { %v1258_v50 = vpop.f32.mrb[1].mxu0 }
  0xf9   :  { %v1292_v13 = vpop.f32.mrb[0].mxu1  ;;  %v1259_v14 = vadd.f32 %v1258_v50, %v1257_v21 }
  0xfa   :  { %v1293_v15 = vpop.f32.mrb[1].mxu1 }
  0xfb   :  { %v1294_v16 = vadd.f32 %v1293_v15, %v1292_v13  ;;  %v237_v17 = vadd.f32 %v1259_v14, %v1201_v48 }
  0xfd   :  { %v307_v18 = vadd.f32 %v1294_v16, %v237_v17 }
 0x117   :  { %v1327_v19 = vpop.f32.mrb[2].mxu0 }
 0x118   :  { %v1328_v20 = vpop.f32.mrb[3].mxu0 }
 0x119   :  { %v1362_v22 = vpop.f32.mrb[2].mxu1  ;;  %v1329_v23 = vadd.f32 %v1328_v20, %v1327_v19 }
 0x11a   :  { %v1363_v24 = vpop.f32.mrb[3].mxu1 }
 0x11b   :  { %v1364_v25 = vadd.f32 %v1363_v24, %v1362_v22  ;;  %v377_v26 = vadd.f32 %v1329_v23, %v307_v18 }
 0x11d   :  { %v2044_v27 = vadd.f32 %v1364_v25, %v377_v26 }
 0x138   :  { %v759_v32 = vpop.f32.mrb[4].mxu0 }
 0x139   :  { %v768_v33 = vmul.f32 %v2053_v31, %v759_v32  ;;  %v761_v34 = vpop.f32.mrb[5].mxu0  ;;  %v851_v42 = vmul.f32 2.0, %v759_v32 }
 0x13a   :  { %v163_v34 = vld [vmem:[%s2206_s5] sm:$0xff] }
 0x13b   :  { %1372 = vmatpush3.msra.mxu1 %v768_v33  ;;  %v770_v35 = vsel %vm769_vm2, %v768_v33, 0.0 }
 0x13c   :  { %1374 = vmatmul.mubr.msk.f32.vlgmr.msra.gmra.mrb[4].mxu1 %vm769_vm2, %v1562_v36  ;;  %771 = vadd.xlane.f32.xlu0 %v770_v35 }
 0x13d   :  { %1376 = vmatprep.subr.mxu1 %v1560_v12  ;;  %1378 = vmatprep.mubr.msk.f32.mxu1 %vm1561_vm0, %v1560_v12 }
 0x142   :  { %1377 = vmatpush3.xpose.msk.msra.mxu1 %vm450_vm14, %v163_v34 }
 0x143   :  { %1381 = vmatprep.subr.mxu1 %v1560_v12 }
 0x145   :  { %1379 = vmatmul.mubr.msk.f32.vlgmr.msra.gmra.mrb[6].mxu1 %vm450_vm14, %v163_v34 }
 0x146   :  { %1383 = vmatprep.mubr.msk.f32.mxu1 %vm1561_vm0, %v1560_v12 }
 0x1c9   :  { %v772_v41 = vpop.xlane.xlu0 %771 }
 0x20f   :  { %v842_v38 = vpop.f32.mrb[4].mxu1 }
 0x210   :  { %v849_v39 = vrot.slane %v842_v38, %v848_v37  ;;  %v1375_v40 = vpop.f32.mrb[5].mxu1 }
 0x212   :  { %v850_v43 = vadd.f32 %v849_v39, %v772_v41 }
 0x214   :  { %v852_v44 = vsub.f32 %v850_v43, %v851_v42  ;;  %v1563_v42 = vmov 0  }
 0x215   :  { %1525 = vset.pattern.permute.xlu0 %v1563_v42 }
 0x216   :  { %v853_v45 = vmax.f32 %v852_v44, 0.0 }
 0x218   :  { %v1024_v46 = vsel %vm769_vm2, %v853_v45, inf  ;;  %v2127_v43 = vpop.f32.mrb[6].mxu1 }
 0x219   :  { %1025 = vmin.xlane.f32.xlu0 %v1024_v46  ;;  %v927_v44 = vmul.f32 %v2053_v31, %v2127_v43  ;;  %v161_v31 = vld [vmem:[%s2204_s3] sm:$0xff]  ;;  %v1006_v34 = vmul.f32 2.0, %v2127_v43 }
 0x21b   :  { %1382 = vmatpush3.msra.mxu1 %v927_v44 }
 0x21c   :  { %1384 = vmatmul.mubr.msk.f32.vlgmr.msra.gmra.mrb[8].mxu1 %vm769_vm2, %v1562_v36 }
 0x2a6   :  { %v2069_v49 = vpop.xlane.xlu0 %1025 }
 0x2a7   :  { %vm1027_vm3 = vcmp.eq.f32.partialorder %v853_v45, %v2069_v49 }
 0x2a8   :  { %v1028_v51 = vsel %vm1027_vm3, %v2067_v47, 8.0 }
 0x2a9   :  { %v1029_v52 = vsel %vm769_vm2, %v1028_v51, inf }
 0x2aa   :  { %1030 = vmin.xlane.f32.xlu1 %v1029_v52 }
 0x337   :  { %v1031_v53 = vpop.xlane.xlu1 %1030 }
 0x338   :  { %vm1032_vm4 = vcmp.eq.f32.partialorder %v2067_v47, %v1031_v53  ;;  %v451_v53 = vsel %vm450_vm14, %v2044_v27, -inf }
 0x339   :  { %v1210_v54 = vsel %vm1032_vm4, 1.0, %v1560_v12  ;;  %vm1056_vm4 = vcmp.eq.s32.totalorder %v2046_v29, 1 }
 0x33a   :  { %v1035_v55 = vmul.f32 1e+30, %v1210_v54 }
 0x33c   :  { %v1036_v56 = vadd.f32 %v1035_v55, %v853_v45  ;;  %v1380_v45 = vpop.f32.mrb[7].mxu1 }
 0x33e   :  { %v1043_v57 = vsel %vm769_vm2, %v1036_v56, inf }
 0x33f   :  { %1044 = vmin.xlane.f32.xlu1 %v1043_v57 }
 0x3cc   :  { %v2077_v58 = vpop.xlane.xlu1 %1044 }
 0x3cd   :  { %vm1046_vm5 = vcmp.eq.f32.partialorder %v1036_v56, %v2077_v58 }
 0x3ce   :  { %v1047_v59 = vsel %vm1046_vm5, %v2067_v47, 8.0  ;;  %vm1037_vm5 = vcmp.eq.s32.totalorder %v2046_v29, 0 }
 0x3cf   :  { %v1048_v60 = vsel %vm769_vm2, %v1047_v59, inf }
 0x3d0   :  { %1049 = vmin.xlane.f32.xlu0 %v1048_v60 }
 0x45d   :  { %v1050_v61 = vpop.xlane.xlu0 %1049 }
 0x45e   :  { %vm1051_vm6 = vcmp.eq.f32.partialorder %v2067_v47, %v1050_v61 }
 0x45f   :  { %v1212_v62 = vsel %vm1051_vm6, 1.0, %v1560_v12  ;;  %vm1075_vm6 = vcmp.eq.s32.totalorder %v2046_v29, 2 }
 0x460   :  { %v1054_v63 = vmul.f32 1e+30, %v1212_v62  ;;  %v1061_v6 = vadd.f32 %v1212_v62, %v1210_v54  ;;  %v928_v62 = vsel %vm769_vm2, %v927_v44, 0.0 }
 0x462   :  { %v1055_v0 = vadd.f32 %v1054_v63, %v1036_v56 }
 0x464   :  { %v1062_v1 = vsel %vm769_vm2, %v1055_v0, inf }
 0x465   :  { %1063 = vmin.xlane.f32.xlu1 %v1062_v1 }
 0x4f2   :  { %v2085_v2 = vpop.xlane.xlu1 %1063 }
 0x4f3   :  { %vm1065_vm7 = vcmp.eq.f32.partialorder %v1055_v0, %v2085_v2 }
 0x4f4   :  { %v1066_v3 = vsel %vm1065_vm7, %v2067_v47, 8.0  ;;  %vm1094_vm7 = vcmp.eq.s32.totalorder %v2046_v29, 3 }
 0x4f5   :  { %v1067_v4 = vsel %vm769_vm2, %v1066_v3, inf }
 0x4f6   :  { %1068 = vmin.xlane.f32.xlu0 %v1067_v4  ;;  %v997_v4 = vpop.f32.mrb[8].mxu1 }
 0x583   :  { %v1069_v5 = vpop.xlane.xlu0 %1068 }
 0x584   :  { %vm1070_vm8 = vcmp.eq.f32.partialorder %v2067_v47, %v1069_v5 }
 0x585   :  { %v1214_v7 = vsel %vm1070_vm8, 1.0, %v1560_v12  ;;  %vm1112_vm8 = vcmp.eq.s32.totalorder %v2046_v29, 4 }
 0x586   :  { %v1073_v8 = vmul.f32 1e+30, %v1214_v7  ;;  %v2092_v9 = vadd.f32 %v1214_v7, %v1061_v6  ;;  %v1385_v6 = vpop.f32.mrb[9].mxu1  ;;  %v1213_v7 = vsel %vm1056_vm4, 1.0, %v1560_v12 }
 0x588   :  { %v1074_v10 = vadd.f32 %v1073_v8, %v1055_v0  ;;  %v1211_v8 = vsel %vm1037_vm5, 1.0, %v1560_v12 }
 0x58a   :  { %v1081_v11 = vsel %vm769_vm2, %v1074_v10, inf }
 0x58b   :  { %1082 = vmin.xlane.f32.xlu1 %v1081_v11  ;;  %v1217_v11 = vsel %vm1094_vm7, 1.0, %v1560_v12 }
 0x618   :  { %v2095_v21 = vpop.xlane.xlu1 %1082 }
 0x619   :  { %vm1084_vm9 = vcmp.eq.f32.partialorder %v1074_v10, %v2095_v21 }
 0x61a   :  { %v1085_v48 = vsel %vm1084_vm9, %v2067_v47, 8.0  ;;  %vm1130_vm9 = vcmp.eq.s32.totalorder %v2046_v29, 5 }
 0x61b   :  { %v1086_v50 = vsel %vm769_vm2, %v1085_v48, inf  ;;  %v1040_v48 = vmul.f32 %v1211_v8, %v2069_v49 }
 0x61c   :  { %1087 = vmin.xlane.f32.xlu0 %v1086_v50 }
 0x6a9   :  { %v1088_v13 = vpop.xlane.xlu0 %1087 }
 0x6aa   :  { %vm1089_vm10 = vcmp.eq.f32.partialorder %v2067_v47, %v1088_v13  ;;  %v1219_v13 = vsel %vm1112_vm8, 1.0, %v1560_v12 }
 0x6ab   :  { %v1216_v14 = vsel %vm1089_vm10, 1.0, %v1560_v12  ;;  %vm1148_vm10 = vcmp.eq.s32.totalorder %v2046_v29, 6 }
 0x6ac   :  { %v1092_v15 = vmul.f32 1e+30, %v1216_v14 }
 0x6ae   :  { %v1093_v16 = vadd.f32 %v1092_v15, %v1074_v10  ;;  %v1059_v10 = vmul.f32 %v1213_v7, %v2077_v58  ;;  %v1097_v15 = vmul.f32 %v1217_v11, %v2095_v21 }
 0x6b0   :  { %v1099_v17 = vsel %vm769_vm2, %v1093_v16, inf  ;;  %v1060_v14 = vadd.f32 %v1059_v10, %v1040_v48 }
 0x6b1   :  { %1100 = vmin.xlane.f32.xlu1 %v1099_v17 }
 0x73e   :  { %v2103_v18 = vpop.xlane.xlu1 %1100 }
 0x73f   :  { %vm1102_vm11 = vcmp.eq.f32.partialorder %v1093_v16, %v2103_v18  ;;  %v1115_v17 = vmul.f32 %v1219_v13, %v2103_v18 }
 0x740   :  { %v1103_v19 = vsel %vm1102_vm11, %v2067_v47, 8.0  ;;  %vm1156_vm11 = vcmp.eq.s32.totalorder %v2046_v29, 7 }
 0x741   :  { %v1104_v20 = vsel %vm769_vm2, %v1103_v19, inf  ;;  %v1223_v19 = vsel %vm1148_vm10, 1.0, %v1560_v12 }
 0x742   :  { %1105 = vmin.xlane.f32.xlu0 %v1104_v20 }
 0x7cf   :  { %v1106_v22 = vpop.xlane.xlu0 %1105 }
 0x7d0   :  { %vm1107_vm12 = vcmp.eq.f32.partialorder %v2067_v47, %v1106_v22 }
 0x7d1   :  { %v1218_v23 = vsel %vm1107_vm12, 1.0, %v1560_v12 }
 0x7d2   :  { %v1110_v24 = vmul.f32 1e+30, %v1218_v23  ;;  %v1224_v23 = vsel %vm1156_vm11, 1.0, %v1560_v12 }
 0x7d4   :  { %v1111_v25 = vadd.f32 %v1110_v24, %v1093_v16  ;;  %v1221_v16 = vsel %vm1130_vm9, 1.0, %v1560_v12 }
 0x7d6   :  { %v1117_v26 = vsel %vm769_vm2, %v1111_v25, inf }
 0x7d7   :  { %1118 = vmin.xlane.f32.xlu1 %v1117_v26 }
 0x864   :  { %v2111_v28 = vpop.xlane.xlu1 %1118 }
 0x865   :  { %vm1120_vm13 = vcmp.eq.f32.partialorder %v1111_v25, %v2111_v28  ;;  %v1133_v49 = vmul.f32 %v1221_v16, %v2111_v28 }
 0x866   :  { %v1121_v32 = vsel %vm1120_vm13, %v2067_v47, 8.0 }
 0x867   :  { %v1122_v33 = vsel %vm769_vm2, %v1121_v32, inf  ;;  %v1004_v32 = vrot.slane %v997_v4, %v848_v37  ;;  %v1208_v37 = vld [vmem:[%s2205_s4] ss:$0 sm:$0xff]  ;;  %s1564_s4 = smov [#allocation2]  }
 0x868   :  { %1123 = vmin.xlane.f32.xlu0 %v1122_v33  ;;  %s1193_s8 = sshll.u32 %s1564_s4, 4  ;;  %s1194_s8 = int_to_ptr.vmem [resolvable:$true] %s1193_s8 }
 0x869   :  { %s1536_s9 = scalar_lea.vmem %s1194_s8, 16  ;;  %s1540_s10 = scalar_lea.vmem %s1194_s8, 32 }
 0x86a   :  { %p1537_p0 = scmp.ne.s32.totalorder %s1194_s8, %s1536_s9  ;;  %p1541_p1 = scmp.lt.s32.totalorder %s1194_s8, %s1194_s8 }
 0x86b   :  { %p1542_p2 = scmp.lt.s32.totalorder %s1540_s10, %s1536_s9 }
 0x86d   :  { %p1543_p3 = por %p1542_p2, %p1541_p1 }
 0x86f   :  { %p1544_p4 = pnand %p1543_p3, %p1537_p0 }
 0x8f5   :  { %v1124_v35 = vpop.xlane.xlu0 %1123 }
 0x8f6   :  { %vm1125_vm15 = vcmp.eq.f32.partialorder %v2067_v47, %v1124_v35 }
 0x8f7   :  { %v1220_v38 = vsel %vm1125_vm15, 1.0, %v1560_v12 }
 0x8f8   :  { %v1128_v39 = vmul.f32 1e+30, %v1220_v38 }
 0x8fa   :  { %v1129_v40 = vadd.f32 %v1128_v39, %v1111_v25 }
 0x8fc   :  { %v1135_v41 = vsel %vm769_vm2, %v1129_v40, inf }
 0x8fd   :  { %1136 = vmin.xlane.f32.xlu1 %v1135_v41 }
 0x98a   :  { %v1137_v46 = vpop.xlane.xlu1 %1136 }
 0x98b   :  { %vm1138_vm0 = vcmp.eq.f32.partialorder %v1129_v40, %v1137_v46  ;;  %v1151_v22 = vmul.f32 %v1223_v19, %v1137_v46 }
 0x98c   :  { %v1139_v51 = vsel %vm1138_vm0, %v2067_v47, 8.0 }
 0x98d   :  { %v1140_v52 = vsel %vm769_vm2, %v1139_v51, inf }
 0x98e   :  { %1141 = vmin.xlane.f32.xlu0 %v1140_v52 }
 0x992   :  { %452 = vmax.xlane.f32.xlu0 %v451_v53 }
 0x9a8   :  { %466 = vperm.xlu0 %1525, %v161_v31  }
 0xa1b   :  { %v1142_v54 = vpop.xlane.xlu0 %1141 }
 0xa1c   :  { %vm1143_vm1 = vcmp.eq.f32.partialorder %v2067_v47, %v1142_v54 }
 0xa1d   :  { %v1222_v36 = vsel %vm1143_vm1, 1.0, %v1560_v12 }
 0xa1e   :  { %v1146_v55 = vmul.f32 1e+30, %v1222_v36 }
 0xa1f   :  { %v2142_v56 = vpop.xlane.xlu0 %452 }
 0xa20   :  { %v454_v57 = vsub.f32 %v2044_v27, %v2142_v56  ;;  %v1147_v59 = vadd.f32 %v1146_v55, %v1129_v40 }
 0xa22   :  { %v455_v60 = vmul.f32 1.442695, %v454_v57  ;;  %v1153_v61 = vsel %vm769_vm2, %v1147_v59, inf }
 0xa23   :  { %1154 = vmin.xlane.f32.xlu1 %v1153_v61 }
 0xa24   :  { %1526 = vpow2.f32 %v455_v60 }
 0xa27   :  { %929 = vadd.xlane.f32.xlu1 %v928_v62  ;;  %v2148_v63 = vpop.permute.xlu0 %466 }
 0xa28   :  { %vm468_vm3 = vcmp.eq.s32.totalorder %v2046_v29, %v2148_v63 }
 0xa29   :  { %v1202_v47 = vsel %vm468_vm3, 1.0, %v1560_v12 }
 0xa2a   :  { %v471_v3 = vmul.f32 %v1202_v47, %v2044_v27  ;;  %v1215_v27 = vsel %vm1075_vm6, 1.0, %v1560_v12 }
 0xa2b   :  { %v1078_v50 = vmul.f32 %v1215_v27, %v2085_v2 }
 0xa2c   :  { %v472_v5 = vsel %vm450_vm14, %v471_v3, 0.0 }
 0xa2d   :  { %v1079_v58 = vadd.f32 %v1078_v50, %v1060_v14 }
 0xa2e   :  { %v1527_v0 = vpop.eup %1526 }
 0xa2f   :  { %v457_v1 = vsel %vm450_vm14, %v1527_v0, 0.0  ;;  %v1098_v20 = vadd.f32 %v1097_v15, %v1079_v58  ;;  %vm1020_vm14 = vcmp.eq.s32.totalorder %v2148_v63, %v1208_v37 }
 0xa30   :  { %458 = vadd.xlane.f32.xlu1 %v457_v1  ;;  %v1209_v53 = vsel %vm1020_vm14, 1.0, %v1560_v12 }
 0xa31   :  { %v1116_v2 = vadd.f32 %v1115_v17, %v1098_v20 }
 0xa33   :  { %v1134_v24 = vadd.f32 %v1133_v49, %v1116_v2 }
 0xa34   :  { %473 = vadd.xlane.f32.xlu1 %v472_v5 }
 0xa35   :  { %v1152_v25 = vadd.f32 %v1151_v22, %v1134_v24 }
 0xab0   :  { %v1155_v21 = vpop.xlane.xlu1 %1154 }
 0xab1   :  { %v1159_v26 = vmul.f32 %v1224_v23, %v1155_v21 }
 0xab3   :  { %v1160_v33 = vadd.f32 %v1159_v26, %v1152_v25 }
 0xab4   :  { %v930_v18 = vpop.xlane.xlu1 %929 }
 0xab5   :  { %1528 = vrsqrt.f32 %v1160_v33  ;;  %v1005_v35 = vadd.f32 %v1004_v32, %v930_v18  ;;  %vm1163_vm12 = vcmp.eq.f32.partialorder %v1160_v33, inf  ;;  %v1166_v40 = vand.u32 2147483648, %v1160_v33 }
 0xab6   :  { %vm1165_vm13 = vcmp.eq.f32.partialorder %v1160_v33, 0.0 }
 0xab7   :  { %v1007_v28 = vsub.f32 %v1005_v35, %v1006_v34 }
 0xab9   :  { %v1008_v38 = vmax.f32 %v1007_v28, 0.0 }
 0xabb   :  { %1530 = vrsqrt.f32 %v1008_v38  ;;  %vm1011_vm15 = vcmp.eq.f32.partialorder %v1008_v38, inf  ;;  %v1014_v31 = vand.u32 2147483648, %v1008_v38  ;;  %vm1013_vm0 = vcmp.eq.f32.partialorder %v1008_v38, 0.0 }
 0xabd   :  { %v459_v59 = vpop.xlane.xlu1 %458 }
 0xabf   :  { %v1529_v29 = vpop.eup %1528 }
 0xac0   :  { %v1162_v39 = vmul.f32 %v1529_v29, %v1160_v33 }
 0xac1   :  { %v474_v63 = vpop.xlane.xlu1 %473 }
 0xac2   :  { %v1164_v41 = vsel %vm1163_vm12, %v1160_v33, %v1162_v39 }
 0xac3   :  { %v1167_v42 = vsel %vm1165_vm13, %v1166_v40, %v1164_v41 }
 0xac4   :  { %v1168_v44 = vsub.f32 0.0, %v1167_v42 }
 0xac5   :  { %v1531_v30 = vpop.eup %1530 }
 0xac6   :  { %v1169_v45 = vmul.f32 1.442695, %v1168_v44  ;;  %v1010_v43 = vmul.f32 %v1531_v30, %v1008_v38 }
 0xac8   :  { %1532 = vpow2.f32 %v1169_v45  ;;  %v1012_v51 = vsel %vm1011_vm15, %v1008_v38, %v1010_v43 }
 0xac9   :  { %v1015_v36 = vsel %vm1013_vm0, %v1014_v31, %v1012_v51  ;;  %1534 = vlog2.f32 %v459_v59 }
 0xad2   :  { %v1533_v46 = vpop.eup %1532 }
 0xad3   :  { %v1171_v52 = vmul.f32 %v1533_v46, %v2092_v9  ;;  %v1535_v60 = vpop.eup %1534 }
 0xad4   :  { %v461_v61 = vmul.f32 0.6931472, %v1535_v60 }
 0xad5   :  { %v1172_v54 = vmul.f32 %v1209_v53, %v1171_v52 }
 0xad6   :  { %v462_v62 = vadd.f32 %v461_v61, %v2142_v56 }
 0xad7   :  { %v1173_v55 = vmul.f32 %v1172_v54, %v1015_v36 }
 0xad8   :  { %v475_v47 = vsub.f32 %v462_v62, %v474_v63 }
 0xad9   :  { %v1174_v57 = vsel %vm769_vm2, %v1173_v55, 0.0  ;;  %vm1185_vm2 = vcmask 0  }
 0xada   :  { %1175 = vadd.xlane.f32.xlu1 %v1174_v57  ;;  %v476_v0 = vrot.slane %v475_v47, 4 }
 0xadc   :  { %v477_v9 = vadd.f32 %v476_v0, %v475_v47 }
 0xade   :  { %v478_v1 = vrot.slane %v477_v9, 2 }
 0xae0   :  { %v479_v3 = vadd.f32 %v478_v1, %v477_v9 }
 0xae2   :  { %v480_v6 = vrot.slane %v479_v3, 1 }
 0xae4   :  { %v481_v10 = vadd.f32 %v480_v6, %v479_v3 }
 0xae6   :  { %v482_v50 = vmul.f32 0.125, %v481_v10 }
 0xb67   :  { %v1176_v12 = vpop.xlane.xlu1 %1175 }
 0xb68   :  { %v1177_v4 = vrot.slane %v1176_v12, 4 }
 0xb6a   :  { %v1178_v5 = vadd.f32 %v1177_v4, %v1176_v12 }
 0xb6c   :  { %v1179_v7 = vrot.slane %v1178_v5, 2 }
 0xb6e   :  { %v1180_v8 = vadd.f32 %v1179_v7, %v1178_v5 }
 0xb70   :  { %v1181_v27 = vrot.slane %v1180_v8, 1 }
 0xb72   :  { %v1182_v11 = vadd.f32 %v1181_v27, %v1180_v8 }
 0xb74   :  { %v1183_v48 = vmul.f32 0.0005, %v1182_v11 }
 0xb76   :  { %v1184_v56 = vadd.f32 %v1183_v48, %v482_v50 }
 0xb78   :  { %1186 = vst.msk [vmem:[#allocation2] sm:$0x1] %vm1185_vm2, %v1184_v56 }
 0xb79   :  { %1547 = shalt.err (!%p1544_p4)
}
 0xb7a   :  { %s1548_s13 = scalar_lea.hbm %s2207_s6, 16 }
 0xb7b   :  { %p1549_p5 = scmp.ne.s32.totalorder %s2207_s6, %s1548_s13  ;;  %p1552_p6 = scmp.lt.u32.totalorder %s1548_s13, %s2207_s6 }
 0xb7d   :  { %p1554_p7 = pnand %p1552_p6, %p1549_p5 }
 0xb7f   :  { %1557 = shalt.err (!%p1554_p7)
}
 0xb80   :  { %1196 = dma.vmem_to_hbm [thread:$0]  %s1194_s8, 16, %s2207_s6, [#allocation3]  }
 0xb81   :  { %1558 = dma.done.wait [#allocation3], 16  }
 0xb82   :  { %1559 = vsyncadd [#allocation3], 4294967280 }
 0xb83   :  { %1200 = vsyncpa [#allocation3], 1 }

</bundles_post_ra>
